<compile_context>
chip_gen: v7x
topology: tpu7x:2x2x1
jax: 0.10.0
libtpu: 0.0.40
codegen_flags: <defaults>
</compile_context>

<pallas_src>
import functools

import jax
import jax.numpy as jnp
from jax.experimental import pallas as pl
from jax.experimental.pallas import tpu as pltpu


def _round_up(x, m):
    return (x + m - 1) // m * m


def _self_attn_kernel(x_ref, win_ref, bin_ref, wout_ref, bout_ref, o_ref,
                      *, n_heads, dp, scale):
    """One (position-tile, batch) block.  Channels on sublanes, positions on lanes.

    x_ref:    (1, C, St)        input block
    win_ref:  (3*H*Dp, C)       proj_in weight, rows reordered to [Q | K | V],
                                head_dim zero-padded to Dp (multiple of 8)
    bin_ref:  (3*H*Dp, 1)       proj_in bias (same row order / padding)
    wout_ref: (C, H*Dp)         proj_out weight (zero-padded columns)
    bout_ref: (C, 1)            proj_out bias
    o_ref:    (1, C, St)        output block
    """
    H, Dp = n_heads, dp
    HDp = H * Dp

    x = x_ref[0]                                               # (C, St)

    # proj_in: one MXU matmul (f32 accumulation), bias broadcast along lanes.
    qkv = jnp.dot(win_ref[...], x, preferred_element_type=jnp.float32)
    qkv = qkv + bin_ref[...]                                   # (3*HDp, St) f32

    # Contiguous, 8-sublane-aligned Q/K/V slabs (host-side row reorder + pad).
    q = qkv[:HDp, :]
    k = qkv[HDp:2 * HDp, :]
    v = qkv[2 * HDp:, :]

    # Heads on a leading axis; each per-head slab is an aligned (Dp, St) view.
    q3 = jnp.stack([q[h * Dp:(h + 1) * Dp, :] for h in range(H)], axis=0)
    k3 = jnp.stack([k[h * Dp:(h + 1) * Dp, :] for h in range(H)], axis=0)
    v3 = jnp.stack([v[h * Dp:(h + 1) * Dp, :] for h in range(H)], axis=0)

    # scores[h1, h2, s] = scale * sum_d q3[h1, d, s] * k3[h2, d, s]
    # (padded d-rows are zero, so they contribute nothing).
    scores = jnp.sum(q3[:, None, :, :] * k3[None, :, :, :], axis=2) * scale

    # Softmax over the key-head axis (axis=1), vectorized over (h1, position).
    m = jnp.max(scores, axis=1, keepdims=True)                 # (H, 1, St)
    e = jnp.exp(scores - m)                                    # one EUP region
    denom = jnp.sum(e, axis=1, keepdims=True)                  # (H, 1, St)
    p = e * pl.reciprocal(denom, approx=True)                  # (H, H, St), EUP vrcp

    # out3[h1, d, s] = sum_h2 p[h1, h2, s] * v3[h2, d, s]
    out3 = jnp.sum(p[:, :, None, :] * v3[None, :, :, :], axis=1)   # (H, Dp, St)
    out = jnp.concatenate([out3[h] for h in range(H)], axis=0)     # (HDp, St)

    # proj_out: one MXU matmul over all (padded) heads at once.
    y = jnp.dot(wout_ref[...], out, preferred_element_type=jnp.float32)
    o_ref[0] = (y + bout_ref[...]).astype(o_ref.dtype)


def self_attention(x, w_in, b_in, w_out, b_out, *, n_heads, head_dim,
                   max_s_tile=8192, vmem_budget_bytes=20 * 1024 * 1024):
    """x: (B, C, H, W).  Weights in PyTorch nn.Linear layout:
    w_in (3*H*D, C), b_in (3*H*D,), w_out (C, H*D), b_out (C,).
    Returns (B, C, H, W) in x.dtype (f32 or bf16 both supported)."""
    B, C, Hs, Ws = x.shape
    S = Hs * Ws
    H, D = n_heads, head_dim
    Dp = _round_up(D, 8)                  # 8-sublane-aligned per-head slabs
    HDp = H * Dp
    scale = float(D) ** -0.5

    # --- Host-side weight repack ------------------------------------------
    # torch packs proj_in rows as (head-major) [q|k|v] blocks of size D:
    # row = h*3D + j.  Reorder to [Q(all heads) | K(all heads) | V(all heads)]
    # and zero-pad each head's D rows to Dp so every kernel slice is aligned.
    w_in_r = w_in.reshape(H, 3, D, C).transpose(1, 0, 2, 3)          # (3,H,D,C)
    w_in_r = jnp.pad(w_in_r, ((0, 0), (0, 0), (0, Dp - D), (0, 0)))
    w_in_r = w_in_r.reshape(3 * HDp, C)
    b_in_r = b_in.reshape(H, 3, D).transpose(1, 0, 2)                # (3,H,D)
    b_in_r = jnp.pad(b_in_r, ((0, 0), (0, 0), (0, Dp - D))).reshape(3 * HDp, 1)
    w_out_r = jnp.pad(w_out.reshape(C, H, D),
                      ((0, 0), (0, 0), (0, Dp - D))).reshape(C, HDp)
    b_out_r = b_out.reshape(C, 1)

    # --- Lane-dense position tiling ---------------------------------------
    # Per-lane f32 bytes of the in-kernel working set (blocks double-buffered):
    #   in+out blocks (4*C) + qkv (3*HDp) + q3/k3/v3 (3*HDp)
    #   + broadcast intermediates (2*H*HDp) + scores/e/p (3*H*8, sublane-padded)
    #   + out3/out (2*HDp) + y (C)
    bytes_per_lane = 4 * (4 * C + 6 * HDp + 2 * H * HDp + 24 * H + 2 * HDp + C)
    cap = max(128, min(max_s_tile,
                       (vmem_budget_bytes // bytes_per_lane) // 128 * 128))
    n_tiles = -(-S // cap)                       # cdiv
    s_tile = _round_up(-(-S // n_tiles), 128)    # >=128, multiple of 128
    S_pad = n_tiles * s_tile

    # NCHW -> (B, C, S): pure reshape.  Zero-pad positions to S_pad; padded
    # positions are independent (attention is per-position) and sliced off.
    x_seq = x.reshape(B, C, S)
    if S_pad != S:
        x_seq = jnp.pad(x_seq, ((0, 0), (0, 0), (0, S_pad - S)))

    kernel = functools.partial(_self_attn_kernel, n_heads=H, dp=Dp, scale=scale)

    out_seq = pl.pallas_call(
        kernel,
        out_shape=jax.ShapeDtypeStruct((B, C, S_pad), x.dtype),
        grid=(n_tiles, B),                       # long axis first (megacore)
        in_specs=[
            pl.BlockSpec((1, C, s_tile), lambda s, b: (b, 0, s)),
            pl.BlockSpec((3 * HDp, C), lambda s, b: (0, 0)),
            pl.BlockSpec((3 * HDp, 1), lambda s, b: (0, 0)),
            pl.BlockSpec((C, HDp), lambda s, b: (0, 0)),
            pl.BlockSpec((C, 1), lambda s, b: (0, 0)),
        ],
        out_specs=pl.BlockSpec((1, C, s_tile), lambda s, b: (b, 0, s)),
        compiler_params=pltpu.CompilerParams(
            dimension_semantics=("parallel", "parallel"),
            vmem_limit_bytes=32 * 1024 * 1024),
    )(x_seq, w_in_r, b_in_r, w_out_r, b_out_r)

    return out_seq[:, :, :S].reshape(B, C, Hs, Ws)


def reference_forward(x, w_in, b_in, w_out, b_out, *, n_heads, head_dim):
    """Pure-JAX reference reproducing the PyTorch forward exactly."""
    B, C, Hs, Ws = x.shape
    S = Hs * Ws
    xs = jnp.transpose(x.reshape(B, C, S), (0, 2, 1))          # (B, S, C)
    qkv = xs @ w_in.T + b_in                                   # (B, S, 3*H*D)
    qkv = qkv.reshape(B, S, n_heads, 3 * head_dim)
    q, k, v = jnp.split(qkv, 3, axis=-1)                       # (B, S, H, D)
    scale = float(head_dim) ** -0.5
    scores = jnp.einsum('bshd,bsgd->bshg', q, k) * scale
    w = jax.nn.softmax(scores, axis=-1)
    out = jnp.einsum('bshg,bsgd->bshd', w, v)
    out = out.reshape(B, S, n_heads * head_dim)
    y = out @ w_out.T + b_out                                  # (B, S, C)
    return jnp.transpose(y, (0, 2, 1)).reshape(B, C, Hs, Ws)


if __name__ == "__main__":
    # Module config (small, deterministic).  dropout_p = 0.0 (module default).
    n_channels = 8
    n_heads = 2
    head_dim = n_channels // n_heads      # 4 (default head_dim = C // n_heads)
    B, Hs, Ws = 2, 8, 8                   # S = 64 (padded to 128 lanes inside)

    key = jax.random.PRNGKey(0)
    k_x, k_w1, k_b1, k_w2, k_b2 = jax.random.split(key, 5)

    HD = n_heads * head_dim
    x = jax.random.normal(k_x, (B, n_channels, Hs, Ws), jnp.float32)
    # nn.Linear layout: (out_features, in_features)
    w_in = 0.1 * jax.random.normal(k_w1, (3 * HD, n_channels), jnp.float32)
    b_in = 0.1 * jax.random.normal(k_b1, (3 * HD,), jnp.float32)
    w_out = 0.1 * jax.random.normal(k_w2, (n_channels, HD), jnp.float32)
    b_out = 0.1 * jax.random.normal(k_b2, (n_channels,), jnp.float32)

    attn = jax.jit(functools.partial(self_attention, n_heads=n_heads,
                                     head_dim=head_dim))
    y = attn(x, w_in, b_in, w_out, b_out)
    y = jax.block_until_ready(y)

    with jax.default_matmul_precision("highest"):
        y_ref = reference_forward(x, w_in, b_in, w_out, b_out,
                                  n_heads=n_heads, head_dim=head_dim)
    y_ref = jax.block_until_ready(y_ref)

    assert y.shape == x.shape
    max_err = float(jnp.max(jnp.abs(y - y_ref)))
    # Tolerance relaxed slightly vs. a bit-exact softmax because the kernel
    # uses the EUP approximate reciprocal (pl.reciprocal(approx=True)).
    assert jnp.allclose(y, y_ref, atol=2e-3, rtol=2e-3), max_err

    print("KERNEL_OK")
</pallas_src>

<mosaic_0001>
module attributes {stable_mosaic.version = 11 : i64} {
  func.func @_self_attn_kernel(%arg0: i32, %arg1: i32, %arg2: memref<1x8x128xf32, #tpu.memory_space<vmem>>, %arg3: memref<48x8xf32, #tpu.memory_space<vmem>>, %arg4: memref<48x1xf32, #tpu.memory_space<vmem>>, %arg5: memref<8x16xf32, #tpu.memory_space<vmem>>, %arg6: memref<8x1xf32, #tpu.memory_space<vmem>>, %arg7: memref<1x8x128xf32, #tpu.memory_space<vmem>>) attributes {dimension_semantics = [#tpu.dimension_semantics<parallel>, #tpu.dimension_semantics<parallel>], iteration_bounds = array<i64: 1, 2>, scalar_prefetch = 0 : i64, scratch_operands = 0 : i64, tpu.core_type = #tpu.core_type<tc>, window_params = [{transform_indices = @transform_0, window_bounds = array<i64: 1, 8, 128>}, {pipeline_mode = #tpu.pipeline_mode<synchronous>, transform_indices = @transform_1, window_bounds = array<i64: 48, 8>}, {pipeline_mode = #tpu.pipeline_mode<synchronous>, transform_indices = @transform_2, window_bounds = array<i64: 48, 1>}, {pipeline_mode = #tpu.pipeline_mode<synchronous>, transform_indices = @transform_3, window_bounds = array<i64: 8, 16>}, {pipeline_mode = #tpu.pipeline_mode<synchronous>, transform_indices = @transform_4, window_bounds = array<i64: 8, 1>}, {transform_indices = @transform_5, window_bounds = array<i64: 1, 8, 128>}]} {
    %c0 = arith.constant 0 : index
    %c0_0 = arith.constant 0 : index
    %c0_1 = arith.constant 0 : index
    %0 = vector.load %arg2[%c0, %c0_0, %c0_1] : memref<1x8x128xf32, #tpu.memory_space<vmem>>, vector<1x8x128xf32>
    %1 = vector.shape_cast %0 : vector<1x8x128xf32> to vector<8x128xf32>
    %c0_2 = arith.constant 0 : index
    %c0_3 = arith.constant 0 : index
    %2 = vector.load %arg3[%c0_2, %c0_3] : memref<48x8xf32, #tpu.memory_space<vmem>>, vector<48x8xf32>
    %cst = arith.constant dense<0.000000e+00> : vector<48x128xf32>
    %3 = tpu.matmul %2, %1, %cst {dimension_numbers = #tpu.dot_dimension_numbers<[1], [0], [0], [1], [0, 0, 1, 1], [], []>} : vector<48x8xf32>, vector<8x128xf32>, vector<48x128xf32> -> vector<48x128xf32>
    %c0_4 = arith.constant 0 : index
    %c0_5 = arith.constant 0 : index
    %4 = vector.load %arg4[%c0_4, %c0_5] : memref<48x1xf32, #tpu.memory_space<vmem>>, vector<48x1xf32>
    %5 = vector.broadcast %4 : vector<48x1xf32> to vector<48x128xf32>
    %6 = arith.addf %3, %5 : vector<48x128xf32>
    %7 = vector.extract_strided_slice %6 {offsets = [0, 0], sizes = [16, 128], strides = [1, 1]} : vector<48x128xf32> to vector<16x128xf32>
    %8 = vector.extract_strided_slice %6 {offsets = [16, 0], sizes = [16, 128], strides = [1, 1]} : vector<48x128xf32> to vector<16x128xf32>
    %9 = vector.extract_strided_slice %6 {offsets = [32, 0], sizes = [16, 128], strides = [1, 1]} : vector<48x128xf32> to vector<16x128xf32>
    %10 = vector.extract_strided_slice %7 {offsets = [0, 0], sizes = [8, 128], strides = [1, 1]} : vector<16x128xf32> to vector<8x128xf32>
    %11 = vector.extract_strided_slice %7 {offsets = [8, 0], sizes = [8, 128], strides = [1, 1]} : vector<16x128xf32> to vector<8x128xf32>
    %12 = vector.shape_cast %10 : vector<8x128xf32> to vector<1x8x128xf32>
    %13 = vector.shape_cast %11 : vector<8x128xf32> to vector<1x8x128xf32>
    %14 = tpu.concatenate %12, %13 in 0 : vector<1x8x128xf32>, vector<1x8x128xf32> -> vector<2x8x128xf32>
    %15 = vector.extract_strided_slice %8 {offsets = [0, 0], sizes = [8, 128], strides = [1, 1]} : vector<16x128xf32> to vector<8x128xf32>
    %16 = vector.extract_strided_slice %8 {offsets = [8, 0], sizes = [8, 128], strides = [1, 1]} : vector<16x128xf32> to vector<8x128xf32>
    %17 = vector.shape_cast %15 : vector<8x128xf32> to vector<1x8x128xf32>
    %18 = vector.shape_cast %16 : vector<8x128xf32> to vector<1x8x128xf32>
    %19 = tpu.concatenate %17, %18 in 0 : vector<1x8x128xf32>, vector<1x8x128xf32> -> vector<2x8x128xf32>
    %20 = vector.extract_strided_slice %9 {offsets = [0, 0], sizes = [8, 128], strides = [1, 1]} : vector<16x128xf32> to vector<8x128xf32>
    %21 = vector.extract_strided_slice %9 {offsets = [8, 0], sizes = [8, 128], strides = [1, 1]} : vector<16x128xf32> to vector<8x128xf32>
    %22 = vector.shape_cast %20 : vector<8x128xf32> to vector<1x8x128xf32>
    %23 = vector.shape_cast %21 : vector<8x128xf32> to vector<1x8x128xf32>
    %24 = tpu.concatenate %22, %23 in 0 : vector<1x8x128xf32>, vector<1x8x128xf32> -> vector<2x8x128xf32>
    %25 = vector.shape_cast %14 : vector<2x8x128xf32> to vector<2x1x8x128xf32>
    %26 = vector.shape_cast %19 : vector<2x8x128xf32> to vector<1x2x8x128xf32>
    %27 = vector.broadcast %25 : vector<2x1x8x128xf32> to vector<2x2x8x128xf32>
    %28 = vector.broadcast %26 : vector<1x2x8x128xf32> to vector<2x2x8x128xf32>
    %29 = arith.mulf %27, %28 : vector<2x2x8x128xf32>
    %cst_6 = arith.constant dense<0.000000e+00> : vector<2x2x128xf32>
    %30 = vector.multi_reduction <add>, %29, %cst_6 [2] : vector<2x2x8x128xf32> to vector<2x2x128xf32>
    %cst_7 = arith.constant 5.000000e-01 : f32
    %31 = vector.broadcast %cst_7 : f32 to vector<2x2x128xf32>
    %32 = arith.mulf %30, %31 : vector<2x2x128xf32>
    %cst_8 = arith.constant dense<0xFF800000> : vector<2x128xf32>
    %33 = vector.multi_reduction <maximumf>, %32, %cst_8 [1] : vector<2x2x128xf32> to vector<2x128xf32>
    %34 = vector.shape_cast %33 : vector<2x128xf32> to vector<2x1x128xf32>
    %35 = vector.broadcast %34 : vector<2x1x128xf32> to vector<2x2x128xf32>
    %36 = arith.subf %32, %35 : vector<2x2x128xf32>
    %37 = math.exp %36 : vector<2x2x128xf32>
    %cst_9 = arith.constant dense<0.000000e+00> : vector<2x128xf32>
    %38 = vector.multi_reduction <add>, %37, %cst_9 [1] : vector<2x2x128xf32> to vector<2x128xf32>
    %39 = vector.shape_cast %38 : vector<2x128xf32> to vector<2x1x128xf32>
    %40 = tpu.reciprocal %39 {approx = true} : vector<2x1x128xf32> -> vector<2x1x128xf32>
    %41 = vector.broadcast %40 : vector<2x1x128xf32> to vector<2x2x128xf32>
    %42 = arith.mulf %37, %41 : vector<2x2x128xf32>
    %43 = vector.shape_cast %42 : vector<2x2x128xf32> to vector<2x2x1x128xf32>
    %44 = vector.shape_cast %24 : vector<2x8x128xf32> to vector<1x2x8x128xf32>
    %45 = vector.broadcast %43 : vector<2x2x1x128xf32> to vector<2x2x8x128xf32>
    %46 = vector.broadcast %44 : vector<1x2x8x128xf32> to vector<2x2x8x128xf32>
    %47 = arith.mulf %45, %46 : vector<2x2x8x128xf32>
    %cst_10 = arith.constant dense<0.000000e+00> : vector<2x8x128xf32>
    %48 = vector.multi_reduction <add>, %47, %cst_10 [1] : vector<2x2x8x128xf32> to vector<2x8x128xf32>
    %49 = vector.extract_strided_slice %48 {offsets = [0, 0, 0], sizes = [1, 8, 128], strides = [1, 1, 1]} : vector<2x8x128xf32> to vector<1x8x128xf32>
    %50 = vector.shape_cast %49 : vector<1x8x128xf32> to vector<8x128xf32>
    %51 = vector.extract_strided_slice %48 {offsets = [1, 0, 0], sizes = [1, 8, 128], strides = [1, 1, 1]} : vector<2x8x128xf32> to vector<1x8x128xf32>
    %52 = vector.shape_cast %51 : vector<1x8x128xf32> to vector<8x128xf32>
    %53 = tpu.concatenate %50, %52 in 0 : vector<8x128xf32>, vector<8x128xf32> -> vector<16x128xf32>
    %c0_11 = arith.constant 0 : index
    %c0_12 = arith.constant 0 : index
    %54 = vector.load %arg5[%c0_11, %c0_12] : memref<8x16xf32, #tpu.memory_space<vmem>>, vector<8x16xf32>
    %cst_13 = arith.constant dense<0.000000e+00> : vector<8x128xf32>
    %55 = tpu.matmul %54, %53, %cst_13 {dimension_numbers = #tpu.dot_dimension_numbers<[1], [0], [0], [1], [0, 0, 1, 1], [], []>} : vector<8x16xf32>, vector<16x128xf32>, vector<8x128xf32> -> vector<8x128xf32>
    %c0_14 = arith.constant 0 : index
    %c0_15 = arith.constant 0 : index
    %56 = vector.load %arg6[%c0_14, %c0_15] : memref<8x1xf32, #tpu.memory_space<vmem>>, vector<8x1xf32>
    %57 = vector.broadcast %56 : vector<8x1xf32> to vector<8x128xf32>
    %58 = arith.addf %55, %57 : vector<8x128xf32>
    %c0_16 = arith.constant 0 : index
    %c0_17 = arith.constant 0 : index
    %c0_18 = arith.constant 0 : index
    %59 = vector.load %arg7[%c0_16, %c0_17, %c0_18] : memref<1x8x128xf32, #tpu.memory_space<vmem>>, vector<1x8x128xf32>
    %60 = vector.shape_cast %59 : vector<1x8x128xf32> to vector<8x128xf32>
    %61 = vector.shape_cast %58 : vector<8x128xf32> to vector<1x8x128xf32>
    tpu.vector_store %arg7[%c0_16, %c0_17, %c0_18], %61 {strides = array<i32>} : memref<1x8x128xf32, #tpu.memory_space<vmem>>, vector<1x8x128xf32>,
    return
  }
  func.func @transform_0(%arg0: i32, %arg1: i32) -> (i32, i32, i32) {
    %c0_i32 = arith.constant 0 : i32
    %c0_i32_0 = arith.constant 0 : i32
    return %arg1, %c0_i32, %arg0 : i32, i32, i32
  }
  func.func @transform_1(%arg0: i32, %arg1: i32) -> (i32, i32) {
    %c0_i32 = arith.constant 0 : i32
    %c0_i32_0 = arith.constant 0 : i32
    %c0_i32_1 = arith.constant 0 : i32
    return %c0_i32, %c0_i32_0 : i32, i32
  }
  func.func @transform_2(%arg0: i32, %arg1: i32) -> (i32, i32) {
    %c0_i32 = arith.constant 0 : i32
    %c0_i32_0 = arith.constant 0 : i32
    %c0_i32_1 = arith.constant 0 : i32
    return %c0_i32, %c0_i32_0 : i32, i32
  }
  func.func @transform_3(%arg0: i32, %arg1: i32) -> (i32, i32) {
    %c0_i32 = arith.constant 0 : i32
    %c0_i32_0 = arith.constant 0 : i32
    %c0_i32_1 = arith.constant 0 : i32
    return %c0_i32, %c0_i32_0 : i32, i32
  }
  func.func @transform_4(%arg0: i32, %arg1: i32) -> (i32, i32) {
    %c0_i32 = arith.constant 0 : i32
    %c0_i32_0 = arith.constant 0 : i32
    %c0_i32_1 = arith.constant 0 : i32
    return %c0_i32, %c0_i32_0 : i32, i32
  }
  func.func @transform_5(%arg0: i32, %arg1: i32) -> (i32, i32, i32) {
    %c0_i32 = arith.constant 0 : i32
    %c0_i32_0 = arith.constant 0 : i32
    return %arg1, %c0_i32, %arg0 : i32, i32, i32
  }
}

</mosaic_0001>

<bundles_post_ra>
// kernel: self_attention.1
= control target key start
LH: loop header
LB: loop body
LE: loop exit
PB: predicated region body
PF: predicated region fallthrough
CT: control target
= control target key end

     0   :  { %s821_s18 = smov 0   ;;  %s823_s19 = smov 0   ;;  %s915_s0 = inlined_call_operand.vmem [shape: f32[2,8,128], index: 0, kind: input, shape index: {}]   ;;  %s916_s1 = inlined_call_operand.vmem [shape: f32[48,8], index: 1, kind: input, shape index: {}]   ;;  %s917_s2 = inlined_call_operand.vmem [shape: f32[48,1], index: 2, kind: input, shape index: {}]   ;;  %s918_s3 = inlined_call_operand.vmem [shape: f32[8,16], index: 3, kind: input, shape index: {}]   ;;  %s919_s4 = inlined_call_operand.vmem [shape: f32[8,1], index: 4, kind: input, shape index: {}]   ;;  %s920_s5 = inlined_call_operand.vmem [shape: f32[2,8,128], index: 5, kind: output, shape index: {}]  }
   0x1   :  { %s825_s20 = smov 0  }
   0x2 LB: > { %s24_s21 = sadd.s32 1, %s781_s19  ;;  %p676_p0 = scmp.ge.s32.totalorder %s785_s20, 1  ;;  %s785_s20 = sphi %s825_s20, %s15_s20   ;;  %s781_s19 = sphi %s823_s19, %s922_s19   ;;  %s777_s18 = sphi %s821_s18, %s921_s18  }
   0x3   : > { %p25_p1 = scmp.ge.s32.totalorder %s24_s21, 2  ;;  %p205_p2 = scmp.lt.s32.totalorder %s785_s20, 3 }
   0x5   : > { %s924_s21 = smov (%p25_p1, %s24_s21), 0  ;;  %p206_p3 = pnand %p676_p0, %p205_p2 }
   0x6   : > { %p237_p4 = scmp.lt.s32.totalorder (!%p206_p3), %s777_s18, 1  ;;  %v252_v0 = vld [vmem:[%s916_s1] sm:$0xff] (!%p206_p3)  ;;  %vm294_vm0 = vcmask (!%p206_p3), 64512   ;;  %v787_v2 = vmov (!%p206_p3), 0   ;;  %v260_v4 = vld [vmem:[%s917_s2 + $0x10] sm:$0xff] (!%p206_p3)  ;;  %v253_v6 = vld [vmem:[%s916_s1 + $0x8] sm:$0xff] (!%p206_p3) }
   0x7   : > { %209 = sbr.rel (%p206_p3) target bundleno = 531 (0x213), region = 40  ;;  %v256_v1 = vld [vmem:[%s916_s1 + $0x20] sm:$0xff] (!%p206_p3)  ;;  %700 = vmatprep.mubr.msk.f32.mxu0 (!%p206_p3), %vm294_vm0, %v252_v0  ;;  %749 = vset.pattern.permute.xlu0 (!%p206_p3), %v787_v2  ;;  %v257_v7 = vld [vmem:[%s916_s1 + $0x28] sm:$0xff] (!%p206_p3)  ;;  %v254_v8 = vld [vmem:[%s916_s1 + $0x10] sm:$0xff] (!%p206_p3)  ;;  %v788_v15 = vmov (!%p206_p3), 0.0|0.0   ;;  %vm789_vm1 = vmmov (!%p206_p3), 0  }
   0x8   : > { %706 = vmatprep.mubr.msk.f32.mxu1 (!%p206_p3), %vm294_vm0, %v256_v1  ;;  %v258_v3 = vld [vmem:[%s917_s2] sm:$0xff] (!%p206_p3)  ;;  %750 = vset.pattern.permute.xlu1 (!%p206_p3), %v787_v2  ;;  %v259_v9 = vld [vmem:[%s917_s2 + $0x8] sm:$0xff] (!%p206_p3)  ;;  %v261_v10 = vld [vmem:[%s917_s2 + $0x18] sm:$0xff] (!%p206_p3)  ;;  %v790_v16 = vmov (!%p206_p3), 0.0   ;;  %vm459_vm2 = vcmask (!%p206_p3), 1041409   ;;  %vm465_vm3 = vcmask (!%p206_p3), 1041408  }
   0x9   : > { %266 = vperm.xlu0 (!%p206_p3), %749, %v258_v3   ;;  %276 = vperm.xlu1 (!%p206_p3), %750, %v260_v4   ;;  %v255_v11 = vld [vmem:[%s916_s1 + $0x18] sm:$0xff] (!%p206_p3)  ;;  %v262_v12 = vld [vmem:[%s917_s2 + $0x20] sm:$0xff] (!%p206_p3)  ;;  %v263_v13 = vld [vmem:[%s917_s2 + $0x28] sm:$0xff] (!%p206_p3)  ;;  %vm523_vm4 = vcmask (!%p206_p3), 130048  }
   0xa   : > { %v517_v14 = vld [vmem:[%s919_s4] sm:$0xff] (!%p206_p3) }
   0xd   : > { %271 = vperm.xlu0 (!%p206_p3), %749, %v259_v9   ;;  %281 = vperm.xlu1 (!%p206_p3), %750, %v261_v10  }
   0xe   : > { %s926_s18 = smov (!%p237_p4, %s777_s18), 1 }
   0xf   : > { %s677_s30 = sshll.u32 %s926_s18, 3 }
  0x10   : > { %s243_s8 = scalar_lea.vmem %s915_s0, %s677_s30  ;;  %s250_s11 = scalar_lea.vmem %s920_s5, %s677_s30 }
  0x11   : > { %v251_v5 = vld [vmem:[%s243_s8] sm:$0xff]  ;;  %286 = vperm.xlu0 %749, %v262_v12   ;;  %291 = vperm.xlu1 %750, %v263_v13  }
  0x12   : > { %698 = vmatprep.subr.mxu0 %v251_v5  ;;  %719 = vmatprep.subr.mxu1 %v251_v5 }
  0x13   : > { %699 = vmatpush3.msra.mxu0 %v251_v5  ;;  %720 = vmatpush3.msra.mxu1 %v251_v5 }
  0x14   : > { %701 = vmatmul.mubr.msk.f32.vlgmr.msra.gmra.mrb[0].mxu0 %vm294_vm0, %v253_v6  ;;  %707 = vmatmul.mubr.msk.f32.vlgmr.msra.gmra.mrb[0].mxu1 %vm294_vm0, %v257_v7 }
  0x15   : > { %703 = vmatprep.mubr.msk.f32.mxu0 %vm294_vm0, %v254_v8  ;;  %520 = vperm.xlu0 %749, %v517_v14  }
  0x16   : > { %716 = vmatprep.subr.bf16.mxu1 %v788_v15  ;;  %713 = vmatprep.mubr.msk.f32.mxu1 %vm789_vm1, %v790_v16 }
  0x18   : > { %704 = vmatmul.mubr.msk.f32.gmra.mrb[2].mxu0 %vm294_vm0, %v255_v11 }
  0x88   : > { %v267_v17 = vpop.permute.xlu0 %266  ;;  %v277_v18 = vpop.permute.xlu1 %276 }
  0x8c   : > { %v272_v23 = vpop.permute.xlu0 %271  ;;  %v282_v24 = vpop.permute.xlu1 %281 }
  0xe7   : > { %v702_v19 = vpop.f32.mrb[0].mxu0  ;;  %v892_v20 = vpop.f32.mrb[0].mxu1 }
  0xe8   : > { %v379_v21 = vpop.f32.mrb[1].mxu0  ;;  %v894_v22 = vpop.f32.mrb[1].mxu1  ;;  %v385_v26 = vadd.f32 %v702_v19, %v272_v23 }
  0xe9   : > { %v380_v27 = vadd.f32 %v379_v21, %v267_v17 }
  0xeb   : > { %v705_v25 = vpop.f32.mrb[2].mxu0 }
  0xec   : > { %v395_v28 = vadd.f32 %v705_v25, %v282_v24  ;;  %v389_v29 = vpop.f32.mrb[3].mxu0 }
  0xed   : > { %v390_v30 = vadd.f32 %v389_v29, %v277_v18 }
  0xee   : > { %v409_v31 = vmul.f32 %v395_v28, %v380_v27  ;;  %v411_v32 = vmul.f32 %v395_v28, %v385_v26 }
  0xef   : > { %v408_v33 = vmul.f32 %v390_v30, %v380_v27  ;;  %v410_v34 = vmul.f32 %v390_v30, %v385_v26 }
  0xf0   : > { %v418_v35 = vrot.slane %v409_v31, 4  ;;  %v430_v36 = vrot.slane %v411_v32, 4 }
  0xf1   : > { %v412_v37 = vrot.slane %v408_v33, 4  ;;  %v424_v38 = vrot.slane %v410_v34, 4 }
  0xf2   : > { %v419_v39 = vadd.f32 %v418_v35, %v409_v31  ;;  %v431_v40 = vadd.f32 %v430_v36, %v411_v32  ;;  %v482_v32 = vlaneseq }
  0xf3   : > { %v413_v41 = vadd.f32 %v412_v37, %v408_v33  ;;  %v425_v42 = vadd.f32 %v424_v38, %v410_v34  ;;  %v292_v37 = vpop.permute.xlu1 %291 }
  0xf4   : > { %v420_v43 = vrot.slane %v419_v39, 2  ;;  %v432_v44 = vrot.slane %v431_v40, 2  ;;  %v483_v34 = vshrl.u32 %v482_v32, 7 }
  0xf5   : > { %v414_v45 = vrot.slane %v413_v41, 2  ;;  %v426_v46 = vrot.slane %v425_v42, 2 }
  0xf6   : > { %v421_v47 = vadd.f32 %v420_v43, %v419_v39  ;;  %v433_v48 = vadd.f32 %v432_v44, %v431_v40  ;;  %v484_v35 = vsub.s32 0, %v483_v34  ;;  %v287_v40 = vpop.permute.xlu0 %286  ;;  %v405_v44 = vadd.f32 %v892_v20, %v292_v37  ;;  %v516_v20 = vld [vmem:[%s918_s3] sm:$0xff] }
  0xf7   : > { %v415_v49 = vadd.f32 %v414_v45, %v413_v41  ;;  %v427_v50 = vadd.f32 %v426_v46, %v425_v42  ;;  %v400_v45 = vadd.f32 %v894_v22, %v287_v40 }
  0xf8   : > { %v422_v51 = vrot.slane %v421_v47, 1  ;;  %v434_v52 = vrot.slane %v433_v48, 1 }
  0xf9   : > { %v416_v53 = vrot.slane %v415_v49, 1  ;;  %v428_v54 = vrot.slane %v427_v50, 1 }
  0xfa   : > { %v423_v55 = vadd.f32 %v422_v51, %v421_v47  ;;  %v435_v56 = vadd.f32 %v434_v52, %v433_v48  ;;  %v521_v22 = vpop.permute.xlu0 %520 }
  0xfb   : > { %v417_v57 = vadd.f32 %v416_v53, %v415_v49  ;;  %v429_v58 = vadd.f32 %v428_v54, %v427_v50 }
  0xfc   : > { %v437_v59 = vmul.f32 0.5, %v423_v55  ;;  %v439_v60 = vmul.f32 0.5, %v435_v56 }
  0xfd   : > { %v436_v61 = vmul.f32 0.5, %v417_v57  ;;  %v438_v62 = vmul.f32 0.5, %v429_v58 }
  0xff   : > { %v440_v63 = vmax.f32 %v436_v61, %v437_v59  ;;  %v441_v0 = vmax.f32 %v438_v62, %v439_v60 }
 0x101   : > { %v442_v1 = vsub.f32 %v436_v61, %v440_v63  ;;  %v443_v2 = vsub.f32 %v437_v59, %v440_v63  ;;  %v444_v3 = vsub.f32 %v438_v62, %v441_v0  ;;  %v445_v4 = vsub.f32 %v439_v60, %v441_v0 }
 0x103   : > { %v446_v5 = vmul.f32 1.442695, %v442_v1  ;;  %v448_v6 = vmul.f32 1.442695, %v443_v2  ;;  %v452_v7 = vmul.f32 1.442695, %v445_v4 }
 0x104   : > { %v450_v8 = vmul.f32 1.442695, %v444_v3 }
 0x105   : > { %751 = vpow2.f32 %v448_v6 }
 0x106   : > { %753 = vpow2.f32 %v446_v5 }
 0x107   : > { %755 = vpow2.f32 %v452_v7 }
 0x108   : > { %757 = vpow2.f32 %v450_v8 }
 0x10f   : > { %v752_v9 = vpop.eup %751 }
 0x110   : > { %v754_v10 = vpop.eup %753  ;;  %v458_v11 = vrot.slane %v752_v9, 7 }
 0x111   : > { %v756_v12 = vpop.eup %755 }
 0x112   : > { %v460_v13 = vsel %vm459_vm2, %v458_v11, %v754_v10  ;;  %v461_v14 = vrot.slane %v756_v12, 7  ;;  %v758_v15 = vpop.eup %757 }
 0x113   : > { %v466_v16 = vsel %vm465_vm3, %v460_v13, 0.0 }
 0x114   : > { %v462_v17 = vsel %vm459_vm2, %v461_v14, %v758_v15  ;;  %v467_v18 = vrot.slane %v466_v16, 4 }
 0x115   : > { %v473_v19 = vsel %vm465_vm3, %v462_v17, 0.0 }
 0x116   : > { %v468_v21 = vadd.f32 %v467_v18, %v466_v16  ;;  %v474_v23 = vrot.slane %v473_v19, 4 }
 0x118   : > { %v475_v24 = vadd.f32 %v474_v23, %v473_v19  ;;  %v469_v25 = vrot.slane %v468_v21, 2 }
 0x11a   : > { %v470_v26 = vadd.f32 %v469_v25, %v468_v21  ;;  %v476_v27 = vrot.slane %v475_v24, 2 }
 0x11c   : > { %v471_v28 = vrot.slane %v470_v26, 1  ;;  %v477_v29 = vadd.f32 %v476_v27, %v475_v24 }
 0x11e   : > { %v472_v30 = vadd.f32 %v471_v28, %v470_v26  ;;  %v478_v31 = vrot.slane %v477_v29, 1 }
 0x120   : > { %v479_v33 = vadd.f32 %v478_v31, %v477_v29  ;;  %759 = vrcp.f32 %v472_v30 }
 0x122   : > { %761 = vrcp.f32 %v479_v33 }
 0x12a   : > { %v760_v36 = vpop.eup %759 }
 0x12b   : > { %v485_v38 = vrot.slane %v760_v36, %v484_v35 }
 0x12c   : > { %v762_v39 = vpop.eup %761 }
 0x12d   : > { %v489_v41 = vrot.slane %v762_v39, %v484_v35  ;;  %v490_v42 = vmul.f32 %v754_v10, %v485_v38  ;;  %v491_v43 = vmul.f32 %v752_v9, %v485_v38 }
 0x12f   : > { %v492_v46 = vmul.f32 %v758_v15, %v489_v41  ;;  %v493_v47 = vmul.f32 %v756_v12, %v489_v41  ;;  %v497_v48 = vrot.slane %v490_v42, %v484_v35  ;;  %v501_v49 = vrot.slane %v491_v43, %v484_v35 }
 0x131   : > { %v505_v50 = vrot.slane %v492_v46, %v484_v35  ;;  %v509_v51 = vrot.slane %v493_v47, %v484_v35  ;;  %v510_v52 = vmul.f32 %v497_v48, %v400_v45  ;;  %v511_v53 = vmul.f32 %v501_v49, %v405_v44 }
 0x133   : > { %v512_v54 = vmul.f32 %v505_v50, %v400_v45  ;;  %v513_v55 = vmul.f32 %v509_v51, %v405_v44  ;;  %v514_v56 = vadd.f32 %v511_v53, %v510_v52 }
 0x135   : > { %v515_v57 = vadd.f32 %v513_v55, %v512_v54 }
 0x137   : > { %v717_v58 = vpack.c.bf16 %v515_v57, %v514_v56 }
 0x139   : > { %718 = vmatpush3.bf16.msra.mxu1 %v717_v58 }
 0x13c   : > { %714 = vmatmul.mubr.msk.f32.vlgmr.msra.gmra.mrb[2].mxu1 %vm523_vm4, %v516_v20 }
 0x20f   : > { %v593_v59 = vpop.f32.mrb[2].mxu1 }
 0x210   : > { %v594_v60 = vadd.f32 %v593_v59, %v521_v22  ;;  %v715_v61 = vpop.f32.mrb[3].mxu1 }
 0x212   : > { %597 = vst [vmem:[%s250_s11] sm:$0xff] %v594_v60 }
 0x213 PF: > { %s15_s20 = sadd.s32 1, %s785_s20   ;;  %s921_s18 = smov %s781_s19 }
 0x214   : > { %p12_p5 = scmp.ge.s32.totalorder %s15_s20, 4   ;;  %s922_s19 = smov %s924_s21 }
 0x216   :  { %14 = sbr.rel (!%p12_p5) target bundleno = 2 (0x2), region = 70 }

</bundles_post_ra>
